<compile_context>
chip_gen: v7x
topology: tpu7x:2x2x1
jax: 0.10.0
libtpu: 0.0.40
codegen_flags: <defaults>
</compile_context>

<pallas_src>
import functools

import jax
import jax.numpy as jnp
import numpy as np
from jax import lax
from jax.experimental import pallas as pl
from jax.experimental.pallas import tpu as pltpu

EPS = 1e-5


# ---------------------------------------------------------------------------
# Fused kernel: one (image, row-tile) grid step.
# ---------------------------------------------------------------------------
def _dense_layer_kernel(xp_ref, xc_ref, xn_ref, s1_ref, b1_ref, w1_ref,
                        s2_ref, b2_ref, w2_ref, cb2_ref, o_ref,
                        *, W, HT, Cin, C4, G, mm_dtype):
    """xp/xc/xn_ref : (1, Cin, 1, TH*W) row tile above / current / below (clamped).
       o_ref       : (1, Cin+G, TH*W)   [x ; conv2] channels of this row tile."""
    THW = o_ref.shape[-1]
    r = pl.program_id(1)

    xc = xc_ref[0, :, 0, :]                                       # (Cin, THW) lane-dense
    xp = xp_ref[0, :, 0, :]
    xn = xn_ref[0, :, 0, :]
    x_top = xp[:, THW - (W + 1):]                                 # last W+1 px of tile above
    x_bot = xn[:, :W + 1]                                         # first W+1 px of tile below

    s1 = s1_ref[...]; b1 = b1_ref[...]
    s2 = s2_ref[...]; b2 = b2_ref[...]                            # b2 has conv1 bias folded in
    w1 = w1_ref[...]; w2 = w2_ref[...]                            # already in mm_dtype

    def stage1(xin):
        # BN1 -> ReLU -> 1x1 conv (matmul, f32 acc) -> BN2(+conv1 bias) -> ReLU
        h = jnp.maximum(xin * s1 + b1, 0.0)
        y = jnp.dot(w1, h.astype(mm_dtype), preferred_element_type=jnp.float32)
        return jnp.maximum(y * s2 + b2, 0.0)

    # lane-dense center and tiny halo strip computed separately
    z_c = stage1(xc).astype(mm_dtype)                             # (C4, THW)
    x_halo = jnp.concatenate([x_top, x_bot], axis=1)              # (Cin, 2W+2)
    z_h = stage1(x_halo)                                          # (C4, 2W+2) f32
    zero = jnp.zeros((), jnp.float32)
    z_top = jnp.where(r == 0, zero, z_h[:, :W + 1]).astype(mm_dtype)      # SAME zero pad (top)
    z_bot = jnp.where(r == HT - 1, zero, z_h[:, W + 1:]).astype(mm_dtype)  # SAME zero pad (bottom)

    # flat slab: [halo_top(W+1) ; center(THW) ; halo_bot(W+1)] in mm_dtype
    z_slab = jnp.concatenate([z_top, z_c, z_bot], axis=1)         # (C4, THW + 2W + 2)

    # ---- 3x3 conv as a single im2col matmul (K = 9*C4) ----
    col = lax.broadcasted_iota(jnp.int32, (1, THW), 1) % W        # image column of each output px
    left_ok = col > 0
    right_ok = col < (W - 1)
    mm_zero = jnp.zeros((), mm_dtype)
    taps = []
    for ky in range(3):
        for kx in range(3):
            off = ky * W + kx
            t = z_slab[:, off: off + THW]                         # static lane-shifted view
            if kx == 0:
                t = jnp.where(left_ok, t, mm_zero)
            elif kx == 2:
                t = jnp.where(right_ok, t, mm_zero)
            taps.append(t)
    stacked = jnp.concatenate(taps, axis=0)                       # (9*C4, THW) mm_dtype
    out_g = jnp.dot(w2, stacked, preferred_element_type=jnp.float32) + cb2_ref[...]

    # ---- fused concat: [x ; conv2] channels of this row tile (lane-dense stores) ----
    o_ref[0, 0:Cin, :] = xc.astype(o_ref.dtype)
    o_ref[0, Cin:Cin + G, :] = out_g.astype(o_ref.dtype)


# ---------------------------------------------------------------------------
# Tile selection (generation-aware VMEM budget).
# ---------------------------------------------------------------------------
def _vmem_budget_bytes():
    cap = 64 * 1024 * 1024                    # conservative default (v7x per-core VMEM)
    try:
        info_fn = getattr(pltpu, "get_tpu_info", None)
        if info_fn is not None:
            cap = int(getattr(info_fn(), "vmem_capacity_bytes", cap) or cap)
    except Exception:
        pass
    return (cap * 3) // 4                     # ~48 MiB on v7x, ~96 MiB on v5e/v6e


def _step_vmem_bytes(TH, W, Cin, C4, G, mm_bytes, out_bytes):
    THW = TH * W
    SLAB = THW + 2 * W + 2
    x_in = 3 * 2 * Cin * THW * 4                    # 3 row-tile inputs, double-buffered f32
    out = 2 * (Cin + G) * THW * out_bytes           # double-buffered output block
    inter = (Cin * THW * 4                          # h (center)
             + 2 * C4 * THW * 4                     # y1 / z (f32) center
             + C4 * SLAB * mm_bytes                 # z_slab (mm_dtype)
             + 9 * C4 * THW * mm_bytes              # im2col stack (mm_dtype)
             + G * THW * 4)                         # conv2 accumulator
    return int(1.5 * (x_in + out + inter))          # headroom for compiler temporaries


def _pick_row_tile(H, W, Cin, C4, G, mm_bytes, out_bytes, budget):
    """Largest divisor TH of H with lane-aligned TH*W that fits the VMEM budget."""
    divisors = [th for th in range(1, H + 1) if H % th == 0]
    aligned = [th for th in divisors if (th * W) % 128 == 0 or th == H]
    if aligned:
        ok = [th for th in aligned if _step_vmem_bytes(th, W, Cin, C4, G,
                                                       mm_bytes, out_bytes) <= budget]
        return max(ok) if ok else min(aligned)
    return H   # TODO(synk): pad W / ragged last tile instead of whole-image fallback.


# ---------------------------------------------------------------------------
# Wrapper: full DenseLayer forward (NCHW in, NCHW out).
# ---------------------------------------------------------------------------
@functools.partial(jax.jit, static_argnames=("matmul_dtype", "out_dtype"))
def dense_layer_forward(x_nchw, params, *, matmul_dtype=jnp.bfloat16,
                        out_dtype=jnp.float32):
    N, Cin, H, W = x_nchw.shape
    C4 = params["conv1_w"].shape[0]
    G = params["conv2_w"].shape[0]
    HW = H * W

    mm_bytes = jnp.dtype(matmul_dtype).itemsize
    out_bytes = jnp.dtype(out_dtype).itemsize
    budget = _vmem_budget_bytes()
    TH = _pick_row_tile(H, W, Cin, C4, G, mm_bytes, out_bytes, budget)
    HT = H // TH
    THW = TH * W

    # channel-major, free reshape: (N, Cin, H, W) -> (N, Cin, HT, TH*W)
    x4 = x_nchw.astype(jnp.float32).reshape(N, Cin, HT, THW)

    # fold inference-mode BN into per-channel scale/bias; fold conv1 bias into BN2 bias
    s1 = params["bn1_gamma"] * lax.rsqrt(params["bn1_var"] + EPS)
    b1 = params["bn1_beta"] - params["bn1_mean"] * s1
    s2 = params["bn2_gamma"] * lax.rsqrt(params["bn2_var"] + EPS)
    b2_eff = params["bn2_beta"] - params["bn2_mean"] * s2 + s2 * params["conv1_b"]

    s1 = s1.reshape(Cin, 1)
    b1 = b1.reshape(Cin, 1)
    s2 = s2.reshape(C4, 1)
    b2_eff = b2_eff.reshape(C4, 1)

    # weights pre-cast to the matmul dtype once (no per-step constant casts in-kernel)
    w1 = params["conv1_w"].reshape(C4, Cin).astype(matmul_dtype)            # 1x1 conv == matmul
    # (G, C4, 3, 3) -> (G, ky, kx, C4) -> (G, 9*C4): matches the kernel's im2col tap order
    w2 = jnp.transpose(params["conv2_w"], (0, 2, 3, 1)).reshape(G, 9 * C4).astype(matmul_dtype)
    cb2 = params["conv2_b"].reshape(G, 1)

    kernel = functools.partial(_dense_layer_kernel, W=W, HT=HT, Cin=Cin, C4=C4, G=G,
                               mm_dtype=matmul_dtype)

    def const(shape):
        return pl.BlockSpec(shape, lambda n, r: (0, 0))

    row_blk = (1, Cin, 1, THW)
    out = pl.pallas_call(
        kernel,
        out_shape=jax.ShapeDtypeStruct((N, Cin + G, HW), out_dtype),
        grid=(N, HT),
        in_specs=[
            pl.BlockSpec(row_blk, lambda n, r: (n, 0, jnp.maximum(r - 1, 0), 0)),       # tile above
            pl.BlockSpec(row_blk, lambda n, r: (n, 0, r, 0)),                           # current tile
            pl.BlockSpec(row_blk, lambda n, r: (n, 0, jnp.minimum(r + 1, HT - 1), 0)),  # tile below
            const((Cin, 1)), const((Cin, 1)),          # folded BN1 scale / bias
            const((C4, Cin)),                          # conv1 weight (mm_dtype)
            const((C4, 1)), const((C4, 1)),            # folded BN2 scale / bias(+conv1 bias)
            const((G, 9 * C4)), const((G, 1)),         # conv2 im2col weight (mm_dtype) / bias
        ],
        out_specs=pl.BlockSpec((1, Cin + G, THW), lambda n, r: (n, 0, r)),
        compiler_params=pltpu.CompilerParams(
            dimension_semantics=("parallel", "parallel"),
            vmem_limit_bytes=budget),
    )(x4, x4, x4, s1, b1, w1, s2, b2_eff, w2, cb2)

    return out.reshape(N, Cin + G, H, W)                          # free reshape, already NCHW


# ---------------------------------------------------------------------------
# Pure-JAX reference (PyTorch NCHW / OIHW conventions, inference-mode BN).
# ---------------------------------------------------------------------------
def dense_layer_reference(x_nchw, params):
    def bc(v):
        return v[None, :, None, None]

    s1 = params["bn1_gamma"] * lax.rsqrt(params["bn1_var"] + EPS)
    b1 = params["bn1_beta"] - params["bn1_mean"] * s1
    s2 = params["bn2_gamma"] * lax.rsqrt(params["bn2_var"] + EPS)
    b2 = params["bn2_beta"] - params["bn2_mean"] * s2

    h = jnp.maximum(x_nchw * bc(s1) + bc(b1), 0.0)
    y = lax.conv_general_dilated(
        h, params["conv1_w"], window_strides=(1, 1), padding="VALID",
        dimension_numbers=("NCHW", "OIHW", "NCHW"),
        precision=lax.Precision.HIGHEST) + bc(params["conv1_b"])
    z = jnp.maximum(y * bc(s2) + bc(b2), 0.0)
    out = lax.conv_general_dilated(
        z, params["conv2_w"], window_strides=(1, 1), padding=((1, 1), (1, 1)),
        dimension_numbers=("NCHW", "OIHW", "NCHW"),
        precision=lax.Precision.HIGHEST) + bc(params["conv2_b"])
    return jnp.concatenate([x_nchw, out], axis=1)


def make_params(key, in_channels, growth_rate):
    C4 = 4 * growth_rate
    ks = jax.random.split(key, 12)
    return dict(
        bn1_gamma=1.0 + 0.1 * jax.random.normal(ks[0], (in_channels,), jnp.float32),
        bn1_beta=0.1 * jax.random.normal(ks[1], (in_channels,), jnp.float32),
        bn1_mean=0.1 * jax.random.normal(ks[2], (in_channels,), jnp.float32),
        bn1_var=jnp.abs(jax.random.normal(ks[3], (in_channels,), jnp.float32)) + 0.5,
        conv1_w=0.2 * jax.random.normal(ks[4], (C4, in_channels, 1, 1), jnp.float32),
        conv1_b=0.1 * jax.random.normal(ks[5], (C4,), jnp.float32),
        bn2_gamma=1.0 + 0.1 * jax.random.normal(ks[6], (C4,), jnp.float32),
        bn2_beta=0.1 * jax.random.normal(ks[7], (C4,), jnp.float32),
        bn2_mean=0.1 * jax.random.normal(ks[8], (C4,), jnp.float32),
        bn2_var=jnp.abs(jax.random.normal(ks[9], (C4,), jnp.float32)) + 0.5,
        conv2_w=0.1 * jax.random.normal(ks[10], (growth_rate, C4, 3, 3), jnp.float32),
        conv2_b=0.1 * jax.random.normal(ks[11], (growth_rate,), jnp.float32),
    )


if __name__ == "__main__":
    key = jax.random.PRNGKey(0)
    k_x, k_p = jax.random.split(key)

    N, Cin, H, W = 2, 4, 16, 16
    growth_rate = 8

    x = jax.random.normal(k_x, (N, Cin, H, W), jnp.float32)       # NCHW, like PyTorch
    params = make_params(k_p, Cin, growth_rate)

    ref = jax.block_until_ready(dense_layer_reference(x, params))

    # full-precision MXU path (tight correctness check)
    out_f32 = jax.block_until_ready(
        dense_layer_forward(x, params, matmul_dtype=jnp.float32, out_dtype=jnp.float32))
    assert out_f32.shape == (N, Cin + growth_rate, H, W), out_f32.shape
    np.testing.assert_allclose(np.asarray(out_f32), np.asarray(ref), rtol=2e-4, atol=2e-4)

    # production default: bf16 MXU operands, f32 accumulation, f32 output
    out_prod = jax.block_until_ready(dense_layer_forward(x, params))
    np.testing.assert_allclose(np.asarray(out_prod), np.asarray(ref), rtol=5e-2, atol=5e-2)

    # bandwidth-saving variant: bf16 output as well (for v5e-style memory-bound deployments)
    out_bf16 = jax.block_until_ready(
        dense_layer_forward(x, params, out_dtype=jnp.bfloat16))
    np.testing.assert_allclose(np.asarray(out_bf16.astype(jnp.float32)), np.asarray(ref),
                               rtol=5e-2, atol=5e-2)

    print("KERNEL_OK")
</pallas_src>

<mosaic_0001>
module attributes {stable_mosaic.version = 11 : i64} {
  func.func @_dense_layer_kernel(%arg0: i32, %arg1: i32, %arg2: memref<1x4x1x256xf32, #tpu.memory_space<vmem>>, %arg3: memref<1x4x1x256xf32, #tpu.memory_space<vmem>>, %arg4: memref<1x4x1x256xf32, #tpu.memory_space<vmem>>, %arg5: memref<4x1xf32, #tpu.memory_space<vmem>>, %arg6: memref<4x1xf32, #tpu.memory_space<vmem>>, %arg7: memref<32x4xf32, #tpu.memory_space<vmem>>, %arg8: memref<32x1xf32, #tpu.memory_space<vmem>>, %arg9: memref<32x1xf32, #tpu.memory_space<vmem>>, %arg10: memref<8x288xf32, #tpu.memory_space<vmem>>, %arg11: memref<8x1xf32, #tpu.memory_space<vmem>>, %arg12: memref<1x12x256xf32, #tpu.memory_space<vmem>>) attributes {dimension_semantics = [#tpu.dimension_semantics<parallel>, #tpu.dimension_semantics<parallel>], iteration_bounds = array<i64: 2, 1>, scalar_prefetch = 0 : i64, scratch_operands = 0 : i64, tpu.core_type = #tpu.core_type<tc>, window_params = [{transform_indices = @transform_0, window_bounds = array<i64: 1, 4, 1, 256>}, {transform_indices = @transform_1, window_bounds = array<i64: 1, 4, 1, 256>}, {transform_indices = @transform_2, window_bounds = array<i64: 1, 4, 1, 256>}, {pipeline_mode = #tpu.pipeline_mode<synchronous>, transform_indices = @transform_3, window_bounds = array<i64: 4, 1>}, {pipeline_mode = #tpu.pipeline_mode<synchronous>, transform_indices = @transform_4, window_bounds = array<i64: 4, 1>}, {pipeline_mode = #tpu.pipeline_mode<synchronous>, transform_indices = @transform_5, window_bounds = array<i64: 32, 4>}, {pipeline_mode = #tpu.pipeline_mode<synchronous>, transform_indices = @transform_6, window_bounds = array<i64: 32, 1>}, {pipeline_mode = #tpu.pipeline_mode<synchronous>, transform_indices = @transform_7, window_bounds = array<i64: 32, 1>}, {pipeline_mode = #tpu.pipeline_mode<synchronous>, transform_indices = @transform_8, window_bounds = array<i64: 8, 288>}, {pipeline_mode = #tpu.pipeline_mode<synchronous>, transform_indices = @transform_9, window_bounds = array<i64: 8, 1>}, {transform_indices = @transform_10, window_bounds = array<i64: 1, 12, 256>}]} {
    %c0 = arith.constant 0 : index
    %c0_0 = arith.constant 0 : index
    %c0_1 = arith.constant 0 : index
    %c0_2 = arith.constant 0 : index
    %0 = vector.load %arg3[%c0, %c0_0, %c0_1, %c0_2] : memref<1x4x1x256xf32, #tpu.memory_space<vmem>>, vector<1x4x1x256xf32>
    %1 = vector.shape_cast %0 : vector<1x4x1x256xf32> to vector<4x256xf32>
    %c0_3 = arith.constant 0 : index
    %c0_4 = arith.constant 0 : index
    %c0_5 = arith.constant 0 : index
    %c0_6 = arith.constant 0 : index
    %2 = vector.load %arg2[%c0_3, %c0_4, %c0_5, %c0_6] : memref<1x4x1x256xf32, #tpu.memory_space<vmem>>, vector<1x4x1x256xf32>
    %3 = vector.shape_cast %2 : vector<1x4x1x256xf32> to vector<4x256xf32>
    %c0_7 = arith.constant 0 : index
    %c0_8 = arith.constant 0 : index
    %c0_9 = arith.constant 0 : index
    %c0_10 = arith.constant 0 : index
    %4 = vector.load %arg4[%c0_7, %c0_8, %c0_9, %c0_10] : memref<1x4x1x256xf32, #tpu.memory_space<vmem>>, vector<1x4x1x256xf32>
    %5 = vector.shape_cast %4 : vector<1x4x1x256xf32> to vector<4x256xf32>
    %6 = vector.extract_strided_slice %3 {offsets = [0, 239], sizes = [4, 17], strides = [1, 1]} : vector<4x256xf32> to vector<4x17xf32>
    %7 = vector.extract_strided_slice %5 {offsets = [0, 0], sizes = [4, 17], strides = [1, 1]} : vector<4x256xf32> to vector<4x17xf32>
    %c0_11 = arith.constant 0 : index
    %c0_12 = arith.constant 0 : index
    %8 = vector.load %arg5[%c0_11, %c0_12] : memref<4x1xf32, #tpu.memory_space<vmem>>, vector<4x1xf32>
    %c0_13 = arith.constant 0 : index
    %c0_14 = arith.constant 0 : index
    %9 = vector.load %arg6[%c0_13, %c0_14] : memref<4x1xf32, #tpu.memory_space<vmem>>, vector<4x1xf32>
    %c0_15 = arith.constant 0 : index
    %c0_16 = arith.constant 0 : index
    %10 = vector.load %arg8[%c0_15, %c0_16] : memref<32x1xf32, #tpu.memory_space<vmem>>, vector<32x1xf32>
    %c0_17 = arith.constant 0 : index
    %c0_18 = arith.constant 0 : index
    %11 = vector.load %arg9[%c0_17, %c0_18] : memref<32x1xf32, #tpu.memory_space<vmem>>, vector<32x1xf32>
    %c0_19 = arith.constant 0 : index
    %c0_20 = arith.constant 0 : index
    %12 = vector.load %arg7[%c0_19, %c0_20] : memref<32x4xf32, #tpu.memory_space<vmem>>, vector<32x4xf32>
    %c0_21 = arith.constant 0 : index
    %c0_22 = arith.constant 0 : index
    %13 = vector.load %arg10[%c0_21, %c0_22] : memref<8x288xf32, #tpu.memory_space<vmem>>, vector<8x288xf32>
    %14 = vector.broadcast %8 : vector<4x1xf32> to vector<4x256xf32>
    %15 = arith.mulf %1, %14 : vector<4x256xf32>
    %16 = vector.broadcast %9 : vector<4x1xf32> to vector<4x256xf32>
    %17 = arith.addf %15, %16 : vector<4x256xf32>
    %cst = arith.constant 0.000000e+00 : f32
    %18 = vector.broadcast %cst : f32 to vector<4x256xf32>
    %19 = arith.maximumf %17, %18 : vector<4x256xf32>
    %cst_23 = arith.constant dense<0.000000e+00> : vector<32x256xf32>
    %20 = tpu.matmul %12, %19, %cst_23 {dimension_numbers = #tpu.dot_dimension_numbers<[1], [0], [0], [1], [0, 0, 1, 1], [], []>} : vector<32x4xf32>, vector<4x256xf32>, vector<32x256xf32> -> vector<32x256xf32>
    %21 = vector.broadcast %10 : vector<32x1xf32> to vector<32x256xf32>
    %22 = arith.mulf %20, %21 : vector<32x256xf32>
    %23 = vector.broadcast %11 : vector<32x1xf32> to vector<32x256xf32>
    %24 = arith.addf %22, %23 : vector<32x256xf32>
    %cst_24 = arith.constant 0.000000e+00 : f32
    %25 = vector.broadcast %cst_24 : f32 to vector<32x256xf32>
    %26 = arith.maximumf %24, %25 : vector<32x256xf32>
    %27 = tpu.concatenate %6, %7 in 1 : vector<4x17xf32>, vector<4x17xf32> -> vector<4x34xf32>
    %28 = vector.broadcast %8 : vector<4x1xf32> to vector<4x34xf32>
    %29 = arith.mulf %27, %28 : vector<4x34xf32>
    %30 = vector.broadcast %9 : vector<4x1xf32> to vector<4x34xf32>
    %31 = arith.addf %29, %30 : vector<4x34xf32>
    %cst_25 = arith.constant 0.000000e+00 : f32
    %32 = vector.broadcast %cst_25 : f32 to vector<4x34xf32>
    %33 = arith.maximumf %31, %32 : vector<4x34xf32>
    %cst_26 = arith.constant dense<0.000000e+00> : vector<32x34xf32>
    %34 = tpu.matmul %12, %33, %cst_26 {dimension_numbers = #tpu.dot_dimension_numbers<[1], [0], [0], [1], [0, 0, 1, 1], [], []>} : vector<32x4xf32>, vector<4x34xf32>, vector<32x34xf32> -> vector<32x34xf32>
    %35 = vector.broadcast %10 : vector<32x1xf32> to vector<32x34xf32>
    %36 = arith.mulf %34, %35 : vector<32x34xf32>
    %37 = vector.broadcast %11 : vector<32x1xf32> to vector<32x34xf32>
    %38 = arith.addf %36, %37 : vector<32x34xf32>
    %cst_27 = arith.constant 0.000000e+00 : f32
    %39 = vector.broadcast %cst_27 : f32 to vector<32x34xf32>
    %40 = arith.maximumf %38, %39 : vector<32x34xf32>
    %c0_i32 = arith.constant 0 : i32
    %41 = arith.cmpi eq, %arg1, %c0_i32 : i32
    %42 = vector.extract_strided_slice %40 {offsets = [0, 0], sizes = [32, 17], strides = [1, 1]} : vector<32x34xf32> to vector<32x17xf32>
    %cst_28 = arith.constant 0.000000e+00 : f32
    %43 = vector.broadcast %cst_28 : f32 to vector<32x17xf32>
    %44 = arith.select %41, %43, %42 : vector<32x17xf32>
    %c0_i32_29 = arith.constant 0 : i32
    %45 = arith.cmpi eq, %arg1, %c0_i32_29 : i32
    %46 = vector.extract_strided_slice %40 {offsets = [0, 17], sizes = [32, 17], strides = [1, 1]} : vector<32x34xf32> to vector<32x17xf32>
    %cst_30 = arith.constant 0.000000e+00 : f32
    %47 = vector.broadcast %cst_30 : f32 to vector<32x17xf32>
    %48 = arith.select %45, %47, %46 : vector<32x17xf32>
    %49 = tpu.concatenate %44, %26, %48 in 1 : vector<32x17xf32>, vector<32x256xf32>, vector<32x17xf32> -> vector<32x290xf32>
    %50 = tpu.iota {dimensions = array<i32: 1>} : vector<1x256xi32>
    %c16_i32 = arith.constant 16 : i32
    %c0_i32_31 = arith.constant 0 : i32
    %51 = arith.cmpi eq, %c16_i32, %c0_i32_31 : i32
    %c1_i32 = arith.constant 1 : i32
    %52 = arith.select %51, %c1_i32, %c16_i32 : i32
    %53 = vector.broadcast %52 : i32 to vector<1x256xi32>
    %54 = arith.remsi %50, %53 : vector<1x256xi32>
    %c0_i32_32 = arith.constant 0 : i32
    %55 = vector.broadcast %c0_i32_32 : i32 to vector<1x256xi32>
    %56 = arith.cmpi ne, %54, %55 : vector<1x256xi32>
    %c0_i32_33 = arith.constant 0 : i32
    %57 = vector.broadcast %c0_i32_33 : i32 to vector<1x256xi32>
    %58 = arith.cmpi slt, %54, %57 : vector<1x256xi32>
    %c0_i32_34 = arith.constant 0 : i32
    %59 = arith.cmpi slt, %52, %c0_i32_34 : i32
    %60 = vector.broadcast %59 : i1 to vector<1x256xi1>
    %61 = vector.broadcast %60 : vector<1x256xi1> to vector<1x256xi1>
    %62 = arith.xori %58, %61 : vector<1x256xi1>
    %63 = arith.andi %62, %56 : vector<1x256xi1>
    %64 = vector.broadcast %52 : i32 to vector<1x256xi32>
    %65 = arith.addi %54, %64 : vector<1x256xi32>
    %66 = arith.select %63, %65, %54 : vector<1x256xi1>, vector<1x256xi32>
    %c0_i32_35 = arith.constant 0 : i32
    %67 = vector.broadcast %c0_i32_35 : i32 to vector<1x256xi32>
    %68 = arith.cmpi sgt, %66, %67 : vector<1x256xi32>
    %c15_i32 = arith.constant 15 : i32
    %69 = vector.broadcast %c15_i32 : i32 to vector<1x256xi32>
    %70 = arith.cmpi slt, %66, %69 : vector<1x256xi32>
    %71 = vector.extract_strided_slice %49 {offsets = [0, 0], sizes = [32, 256], strides = [1, 1]} : vector<32x290xf32> to vector<32x256xf32>
    %cst_36 = arith.constant 0.000000e+00 : f32
    %72 = vector.shape_cast %68 : vector<1x256xi1> to vector<1x256xi1>
    %73 = vector.broadcast %72 : vector<1x256xi1> to vector<32x256xi1>
    %74 = vector.broadcast %cst_36 : f32 to vector<32x256xf32>
    %75 = arith.select %73, %71, %74 : vector<32x256xi1>, vector<32x256xf32>
    %76 = vector.extract_strided_slice %49 {offsets = [0, 1], sizes = [32, 256], strides = [1, 1]} : vector<32x290xf32> to vector<32x256xf32>
    %77 = vector.extract_strided_slice %49 {offsets = [0, 2], sizes = [32, 256], strides = [1, 1]} : vector<32x290xf32> to vector<32x256xf32>
    %cst_37 = arith.constant 0.000000e+00 : f32
    %78 = vector.shape_cast %70 : vector<1x256xi1> to vector<1x256xi1>
    %79 = vector.broadcast %78 : vector<1x256xi1> to vector<32x256xi1>
    %80 = vector.broadcast %cst_37 : f32 to vector<32x256xf32>
    %81 = arith.select %79, %77, %80 : vector<32x256xi1>, vector<32x256xf32>
    %82 = vector.extract_strided_slice %49 {offsets = [0, 16], sizes = [32, 256], strides = [1, 1]} : vector<32x290xf32> to vector<32x256xf32>
    %cst_38 = arith.constant 0.000000e+00 : f32
    %83 = vector.shape_cast %68 : vector<1x256xi1> to vector<1x256xi1>
    %84 = vector.broadcast %83 : vector<1x256xi1> to vector<32x256xi1>
    %85 = vector.broadcast %cst_38 : f32 to vector<32x256xf32>
    %86 = arith.select %84, %82, %85 : vector<32x256xi1>, vector<32x256xf32>
    %87 = vector.extract_strided_slice %49 {offsets = [0, 17], sizes = [32, 256], strides = [1, 1]} : vector<32x290xf32> to vector<32x256xf32>
    %88 = vector.extract_strided_slice %49 {offsets = [0, 18], sizes = [32, 256], strides = [1, 1]} : vector<32x290xf32> to vector<32x256xf32>
    %cst_39 = arith.constant 0.000000e+00 : f32
    %89 = vector.shape_cast %70 : vector<1x256xi1> to vector<1x256xi1>
    %90 = vector.broadcast %89 : vector<1x256xi1> to vector<32x256xi1>
    %91 = vector.broadcast %cst_39 : f32 to vector<32x256xf32>
    %92 = arith.select %90, %88, %91 : vector<32x256xi1>, vector<32x256xf32>
    %93 = vector.extract_strided_slice %49 {offsets = [0, 32], sizes = [32, 256], strides = [1, 1]} : vector<32x290xf32> to vector<32x256xf32>
    %cst_40 = arith.constant 0.000000e+00 : f32
    %94 = vector.shape_cast %68 : vector<1x256xi1> to vector<1x256xi1>
    %95 = vector.broadcast %94 : vector<1x256xi1> to vector<32x256xi1>
    %96 = vector.broadcast %cst_40 : f32 to vector<32x256xf32>
    %97 = arith.select %95, %93, %96 : vector<32x256xi1>, vector<32x256xf32>
    %98 = vector.extract_strided_slice %49 {offsets = [0, 33], sizes = [32, 256], strides = [1, 1]} : vector<32x290xf32> to vector<32x256xf32>
    %99 = vector.extract_strided_slice %49 {offsets = [0, 34], sizes = [32, 256], strides = [1, 1]} : vector<32x290xf32> to vector<32x256xf32>
    %cst_41 = arith.constant 0.000000e+00 : f32
    %100 = vector.shape_cast %70 : vector<1x256xi1> to vector<1x256xi1>
    %101 = vector.broadcast %100 : vector<1x256xi1> to vector<32x256xi1>
    %102 = vector.broadcast %cst_41 : f32 to vector<32x256xf32>
    %103 = arith.select %101, %99, %102 : vector<32x256xi1>, vector<32x256xf32>
    %104 = tpu.concatenate %75, %76, %81, %86, %87, %92, %97, %98, %103 in 0 : vector<32x256xf32>, vector<32x256xf32>, vector<32x256xf32>, vector<32x256xf32>, vector<32x256xf32>, vector<32x256xf32>, vector<32x256xf32>, vector<32x256xf32>, vector<32x256xf32> -> vector<288x256xf32>
    %cst_42 = arith.constant dense<0.000000e+00> : vector<8x256xf32>
    %105 = tpu.matmul %13, %104, %cst_42 {dimension_numbers = #tpu.dot_dimension_numbers<[1], [0], [0], [1], [0, 0, 1, 1], [], []>} : vector<8x288xf32>, vector<288x256xf32>, vector<8x256xf32> -> vector<8x256xf32>
    %c0_43 = arith.constant 0 : index
    %c0_44 = arith.constant 0 : index
    %106 = vector.load %arg11[%c0_43, %c0_44] : memref<8x1xf32, #tpu.memory_space<vmem>>, vector<8x1xf32>
    %107 = vector.broadcast %106 : vector<8x1xf32> to vector<8x256xf32>
    %108 = arith.addf %105, %107 : vector<8x256xf32>
    %c0_45 = arith.constant 0 : index
    %c0_46 = arith.constant 0 : index
    %c0_47 = arith.constant 0 : index
    %109 = vector.load %arg12[%c0_45, %c0_46, %c0_47] : memref<1x12x256xf32, #tpu.memory_space<vmem>>, vector<1x4x256xf32>
    %110 = vector.shape_cast %109 : vector<1x4x256xf32> to vector<4x256xf32>
    %111 = vector.shape_cast %1 : vector<4x256xf32> to vector<1x4x256xf32>
    tpu.vector_store %arg12[%c0_45, %c0_46, %c0_47], %111 {strides = array<i32>} : memref<1x12x256xf32, #tpu.memory_space<vmem>>, vector<1x4x256xf32>,
    %c0_48 = arith.constant 0 : index
    %c4 = arith.constant 4 : index
    %c0_49 = arith.constant 0 : index
    %112 = vector.load %arg12[%c0_48, %c4, %c0_49] : memref<1x12x256xf32, #tpu.memory_space<vmem>>, vector<1x8x256xf32>
    %113 = vector.shape_cast %112 : vector<1x8x256xf32> to vector<8x256xf32>
    %114 = vector.shape_cast %108 : vector<8x256xf32> to vector<1x8x256xf32>
    tpu.vector_store %arg12[%c0_48, %c4, %c0_49], %114 {strides = array<i32>} : memref<1x12x256xf32, #tpu.memory_space<vmem>>, vector<1x8x256xf32>,
    return
  }
  func.func @transform_0(%arg0: i32, %arg1: i32) -> (i32, i32, i32, i32) {
    %c1_i32 = arith.constant 1 : i32
    %0 = arith.subi %arg1, %c1_i32 : i32
    %c0_i32 = arith.constant 0 : i32
    %1 = arith.maxsi %0, %c0_i32 : i32
    %c0_i32_0 = arith.constant 0 : i32
    %c0_i32_1 = arith.constant 0 : i32
    %c0_i32_2 = arith.constant 0 : i32
    return %arg0, %c0_i32_0, %1, %c0_i32_1 : i32, i32, i32, i32
  }
  func.func @transform_1(%arg0: i32, %arg1: i32) -> (i32, i32, i32, i32) {
    %c0_i32 = arith.constant 0 : i32
    %c0_i32_0 = arith.constant 0 : i32
    %c0_i32_1 = arith.constant 0 : i32
    return %arg0, %c0_i32, %arg1, %c0_i32_0 : i32, i32, i32, i32
  }
  func.func @transform_2(%arg0: i32, %arg1: i32) -> (i32, i32, i32, i32) {
    %c1_i32 = arith.constant 1 : i32
    %0 = arith.addi %arg1, %c1_i32 : i32
    %c0_i32 = arith.constant 0 : i32
    %1 = arith.minsi %0, %c0_i32 : i32
    %c0_i32_0 = arith.constant 0 : i32
    %c0_i32_1 = arith.constant 0 : i32
    %c0_i32_2 = arith.constant 0 : i32
    return %arg0, %c0_i32_0, %1, %c0_i32_1 : i32, i32, i32, i32
  }
  func.func @transform_3(%arg0: i32, %arg1: i32) -> (i32, i32) {
    %c0_i32 = arith.constant 0 : i32
    %c0_i32_0 = arith.constant 0 : i32
    %c0_i32_1 = arith.constant 0 : i32
    return %c0_i32, %c0_i32_0 : i32, i32
  }
  func.func @transform_4(%arg0: i32, %arg1: i32) -> (i32, i32) {
    %c0_i32 = arith.constant 0 : i32
    %c0_i32_0 = arith.constant 0 : i32
    %c0_i32_1 = arith.constant 0 : i32
    return %c0_i32, %c0_i32_0 : i32, i32
  }
  func.func @transform_5(%arg0: i32, %arg1: i32) -> (i32, i32) {
    %c0_i32 = arith.constant 0 : i32
    %c0_i32_0 = arith.constant 0 : i32
    %c0_i32_1 = arith.constant 0 : i32
    return %c0_i32, %c0_i32_0 : i32, i32
  }
  func.func @transform_6(%arg0: i32, %arg1: i32) -> (i32, i32) {
    %c0_i32 = arith.constant 0 : i32
    %c0_i32_0 = arith.constant 0 : i32
    %c0_i32_1 = arith.constant 0 : i32
    return %c0_i32, %c0_i32_0 : i32, i32
  }
  func.func @transform_7(%arg0: i32, %arg1: i32) -> (i32, i32) {
    %c0_i32 = arith.constant 0 : i32
    %c0_i32_0 = arith.constant 0 : i32
    %c0_i32_1 = arith.constant 0 : i32
    return %c0_i32, %c0_i32_0 : i32, i32
  }
  func.func @transform_8(%arg0: i32, %arg1: i32) -> (i32, i32) {
    %c0_i32 = arith.constant 0 : i32
    %c0_i32_0 = arith.constant 0 : i32
    %c0_i32_1 = arith.constant 0 : i32
    return %c0_i32, %c0_i32_0 : i32, i32
  }
  func.func @transform_9(%arg0: i32, %arg1: i32) -> (i32, i32) {
    %c0_i32 = arith.constant 0 : i32
    %c0_i32_0 = arith.constant 0 : i32
    %c0_i32_1 = arith.constant 0 : i32
    return %c0_i32, %c0_i32_0 : i32, i32
  }
  func.func @transform_10(%arg0: i32, %arg1: i32) -> (i32, i32, i32) {
    %c0_i32 = arith.constant 0 : i32
    %c0_i32_0 = arith.constant 0 : i32
    return %arg0, %c0_i32, %arg1 : i32, i32, i32
  }
}

</mosaic_0001>

<bundles_post_ra>
// kernel: dense_layer_forward.1
= control target key start
LH: loop header
LB: loop body
LE: loop exit
PB: predicated region body
PF: predicated region fallthrough
CT: control target
= control target key end

     0   :  { %s2348_s13 = smov 0   ;;  %s2350_s14 = smov 0   ;;  %s2881_s0 = inlined_call_operand.vmem [shape: f32[2,4,1,256], index: 0, kind: input, shape index: {}, may-alias: {0,1,2}]   ;;  %s2882_s1 = inlined_call_operand.vmem [shape: f32[2,4,1,256], index: 1, kind: input, shape index: {}, may-alias: {0,1,2}]   ;;  %s2883_s2 = inlined_call_operand.vmem [shape: f32[2,4,1,256], index: 2, kind: input, shape index: {}, may-alias: {0,1,2}]   ;;  %s2884_s3 = inlined_call_operand.vmem [shape: f32[4,1], index: 3, kind: input, shape index: {}]   ;;  %s2885_s4 = inlined_call_operand.vmem [shape: f32[4,1], index: 4, kind: input, shape index: {}]   ;;  %s2886_s5 = inlined_call_operand.vmem [shape: f32[32,4], index: 5, kind: input, shape index: {}]   ;;  %s2887_s6 = inlined_call_operand.vmem [shape: f32[32,1], index: 6, kind: input, shape index: {}]   ;;  %s2888_s7 = inlined_call_operand.vmem [shape: f32[32,1], index: 7, kind: input, shape index: {}]   ;;  %s2889_s8 = inlined_call_operand.vmem [shape: f32[8,288], index: 8, kind: input, shape index: {}]   ;;  %s2890_s9 = inlined_call_operand.vmem [shape: f32[8,1], index: 9, kind: input, shape index: {}]   ;;  %s2891_s10 = inlined_call_operand.vmem [shape: f32[2,12,256], index: 10, kind: output, shape index: {}]  }
   0x1   :  { %s2352_s15 = smov 0  }
   0x2 LB: > { %s32_s16 = sadd.s32 1, %s2275_s14  ;;  %p1771_p0 = scmp.ge.s32.totalorder %s2279_s15, 1  ;;  %s2279_s15 = sphi %s2352_s15, %s20_s15   ;;  %s2275_s14 = sphi %s2350_s14, %s2905_s14   ;;  %s2271_s13 = sphi %s2348_s13, %s2904_s13  }
   0x3   : > { %p34_p1 = scmp.ge.s32.totalorder %s32_s16, 2  ;;  %p385_p2 = scmp.lt.s32.totalorder %s2279_s15, 3 }
   0x5   : > { %s2907_s16 = smov (%p34_p1, %s32_s16), 0  ;;  %p386_p3 = pnand %p1771_p0, %p385_p2 }
   0x6   : > { %v510_v0 = vld [vmem:[%s2884_s3] sm:$0xf] (!%p386_p3)  ;;  %v2281_v1 = vmov (!%p386_p3), 0   ;;  %v514_v4 = vld [vmem:[%s2887_s6 + $0x10] sm:$0xff] (!%p386_p3)  ;;  %v2282_v6 = vmov (!%p386_p3), 0.0   ;;  %v513_v8 = vld [vmem:[%s2887_s6 + $0x8] sm:$0xff] (!%p386_p3)  ;;  %v531_v12 = vlaneseq (!%p386_p3) }
   0x7   : > { %389 = sbr.rel (%p386_p3) target bundleno = 939 (0x3ab), region = 60  ;;  %1991 = vset.pattern.permute.xlu0 (!%p386_p3), %v2281_v1  ;;  %1992 = vset.pattern.permute.xlu1 (!%p386_p3), %v2281_v1  ;;  %v511_v2 = vld [vmem:[%s2885_s4] sm:$0xf] (!%p386_p3)  ;;  %v518_v5 = vld [vmem:[%s2888_s7 + $0x10] sm:$0xff] (!%p386_p3)  ;;  %v517_v9 = vld [vmem:[%s2888_s7 + $0x8] sm:$0xff] (!%p386_p3)  ;;  %p455_p4 = scmp.lt.s32.totalorder (!%p386_p3), %s2271_s13, 1 }
   0x8   : > { %529 = vperm.xlu0 (!%p386_p3), %1991, %v510_v0   ;;  %v516_v3 = vld [vmem:[%s2888_s7] sm:$0xff] (!%p386_p3)  ;;  %705 = vmatprep.mubr.f32.mxu0 (!%p386_p3), %v2282_v6  ;;  %v515_v10 = vld [vmem:[%s2887_s6 + $0x18] sm:$0xff] (!%p386_p3)  ;;  %v532_v13 = vshrl.u32 (!%p386_p3), %v531_v12, 7  ;;  %v2283_v18 = vmov (!%p386_p3), 1966171168   ;;  %vm636_vm0 = vcmask (!%p386_p3), 1043456  }
   0x9   : > { %v512_v7 = vld [vmem:[%s2887_s6] sm:$0xff] (!%p386_p3)  ;;  %v519_v11 = vld [vmem:[%s2888_s7 + $0x18] sm:$0xff] (!%p386_p3)  ;;  %v594_v19 = vunpack.c.l.s4 (!%p386_p3), %v2283_v18  ;;  %vm623_vm1 = vcmask (!%p386_p3), 31744   ;;  %v2445_v57 = vld [vmem:[%s2886_s5 + $0x8] sm:$0xff] (!%p386_p3)  ;;  %s2284_s17 = smov (!%p386_p3), 17   ;;  %vm856_vm2 = vcmask (!%p386_p3), 138240  }
   0xa   : > { %732 = vperm.xlu1 (!%p386_p3), %1992, %v512_v7   ;;  %v533_v14 = vsub.s32 (!%p386_p3), 0, %v532_v13  ;;  %v537_v15 = vsub.s32 (!%p386_p3), 1, %v532_v13  ;;  %v541_v16 = vsub.s32 (!%p386_p3), 2, %v532_v13  ;;  %v545_v17 = vsub.s32 (!%p386_p3), 3, %v532_v13  ;;  %v520_v56 = vld [vmem:[%s2886_s5] sm:$0xff] (!%p386_p3)  ;;  %v2453_v58 = vld [vmem:[%s2886_s5 + $0x10] sm:$0xff] (!%p386_p3) }
   0xb   : > { %v595_v29 = vunpack.c.0.s8 (!%p386_p3), %v594_v19  ;;  %v2461_v59 = vld [vmem:[%s2886_s5 + $0x18] sm:$0xff] (!%p386_p3)  ;;  %s2285_s18 = smov (!%p386_p3), 127   ;;  %s2286_s19 = smov (!%p386_p3), 126   ;;  %vm1343_vm7 = vcmask (!%p386_p3), 1039360   ;;  %vm1098_vm8 = vcmask (!%p386_p3), 1031168   ;;  %vm1147_vm12 = vcmask (!%p386_p3), 916480  }
   0xc   : > { %557 = vperm.xlu0 (!%p386_p3), %1991, %v511_v2   ;;  %s2287_s20 = smov (!%p386_p3), 112   ;;  %s2288_s22 = smov (!%p386_p3), 111   ;;  %vm1384_vm14 = vcmask (!%p386_p3), 908288   ;;  %vm1196_vm15 = vcmask (!%p386_p3), 900096  }
   0xd   : > { %v2429_v43 = vsub.s32 (!%p386_p3), %v595_v29, %v532_v13  ;;  %s2289_s23 = smov (!%p386_p3), 110   ;;  %s2290_s25 = smov (!%p386_p3), 96  }
   0xe   : > { %737 = vperm.xlu1 %1992, %v513_v8   ;;  %s2909_s13 = smov (!%p455_p4, %s2271_s13), 1  ;;  %s2292_s12 = smov 94  }
   0xf   : > { %s2405_s21 = sshll.u32 %s2909_s13, 3  ;;  %s1841_s27 = sshll.u32 %s2909_s13, 5 }
  0x10   : > { %760 = vperm.xlu0 %1991, %v516_v3   ;;  %s2411_s24 = scalar_lea.vmem %s2882_s1, %s2405_s21  ;;  %s484_s28 = scalar_lea.vmem %s2883_s2, %s2405_s21 }
  0x11   : > { %v498_v21 = vld [vmem:[%s2411_s24] sm:$0x3]  ;;  %v499_v22 = vld [vmem:[%s2411_s24 + $0x2] sm:$0x3]  ;;  %v500_v23 = vld [vmem:[%s2411_s24 + $0x4] sm:$0x3]  ;;  %s462_s11 = scalar_lea.vmem %s2881_s0, %s2405_s21  ;;  %s496_s30 = scalar_lea.vmem %s2891_s10, %s1841_s27 }
  0x12   : > { %765 = vperm.xlu1 %1992, %v517_v9   ;;  %v501_v24 = vld [vmem:[%s2411_s24 + $0x6] sm:$0x3]  ;;  %s2291_s21 = smov 95  }
  0x14   : > { %742 = vperm.xlu0 %1991, %v514_v4  }
  0x16   : > { %747 = vperm.xlu1 %1992, %v515_v10  }
  0x18   : > { %770 = vperm.xlu0 %1991, %v518_v5  }
  0x1a   : > { %775 = vperm.xlu1 %1992, %v519_v11  }
  0x87   : > { %v2413_v20 = vpop.permute.xlu0 %529 }
  0x88   : > { %v534_v25 = vrot.slane %v2413_v20, %v533_v14  ;;  %v538_v26 = vrot.slane %v2413_v20, %v537_v15  ;;  %v542_v27 = vrot.slane %v2413_v20, %v541_v16  ;;  %v546_v28 = vrot.slane %v2413_v20, %v545_v17 }
  0x89   : > { %v733_v60 = vpop.permute.xlu1 %732 }
  0x8a   : > { %v551_v30 = vmul.f32 %v534_v25, %v498_v21  ;;  %v552_v31 = vmul.f32 %v538_v26, %v499_v22  ;;  %v553_v32 = vmul.f32 %v542_v27, %v500_v23  ;;  %v554_v33 = vmul.f32 %v546_v28, %v501_v24 }
  0x8b   : > { %v2423_v34 = vpop.permute.xlu0 %557 }
  0x8c   : > { %v562_v35 = vrot.slane %v2423_v34, %v533_v14  ;;  %v566_v36 = vrot.slane %v2423_v34, %v537_v15  ;;  %v570_v37 = vrot.slane %v2423_v34, %v541_v16  ;;  %v574_v38 = vrot.slane %v2423_v34, %v545_v17 }
  0x8d   : > { %v738_v61 = vpop.permute.xlu1 %737 }
  0x8e   : > { %v579_v39 = vadd.f32 %v562_v35, %v551_v30  ;;  %v580_v40 = vadd.f32 %v566_v36, %v552_v31  ;;  %v581_v41 = vadd.f32 %v570_v37, %v553_v32  ;;  %v582_v42 = vadd.f32 %v574_v38, %v554_v33 }
  0x8f   : > { %v761_v62 = vpop.permute.xlu0 %760 }
  0x90   : > { %v583_v44 = vmax.f32 %v579_v39, 0.0  ;;  %v584_v45 = vmax.f32 %v580_v40, 0.0  ;;  %v585_v46 = vmax.f32 %v581_v41, 0.0  ;;  %v586_v47 = vmax.f32 %v582_v42, 0.0 }
  0x91   : > { %v766_v2 = vpop.permute.xlu1 %765 }
  0x92   : > { %v591_v48 = vcombine.low %v583_v44, %v584_v45  ;;  %v592_v49 = vcombine.low %v585_v46, %v586_v47  ;;  %v2471_v45 = vand.u32 127, %v531_v12 }
  0x93   : > { %v743_v5 = vpop.permute.xlu0 %742 }
  0x94   : > { %v599_v50 = vrot.slane %v591_v48, %v2429_v43  ;;  %v606_v51 = vrot.slane %v592_v49, %v2429_v43  ;;  %v2474_v46 = vadd.s32 128, %v2471_v45 }
  0x95   : > { %v748_v16 = vpop.permute.xlu1 %747 }
  0x96   : > { %v608_v52 = vcombine.high %v599_v50, %v606_v51  ;;  %v607_v53 = vcombine.low %v599_v50, %v606_v51  ;;  %v1033_v48 = vand.u32 15, %v2474_v46  ;;  %v1026_v51 = vand.u32 15, %v2471_v45  ;;  %v526_v45 = vld [vmem:[%s2889_s8 + $0x10] sm:$0xff] }
  0x97   : > { %v771_v24 = vpop.permute.xlu0 %770 }
  0x98   : > { %v622_v54 = vrot.slane %v608_v52, %v2429_v43  ;;  %v615_v55 = vrot.slane %v607_v53, %v2429_v43  ;;  %vm1047_vm3 = vcmp.gt.s32.totalorder %v1033_v48, 0  ;;  %vm1046_vm4 = vcmp.gt.s32.totalorder %v1026_v51, 0 }
  0x99   : > { %v776_v35 = vpop.permute.xlu1 %775  ;;  %vm2492_vm5 = vmpackc.low %vm1047_vm3, %vm1047_vm3  ;;  %vm2667_vm9 = vcmp.lt.s32.totalorder %v1033_v48, 15  ;;  %vm2676_vm10 = vcmp.lt.s32.totalorder %v1026_v51, 15  ;;  %vm1448_vm3 = vcmask 261120  }
  0x9a   : > { %1777 = vmatprep.subr.msk.mxu0 %vm636_vm0, %v622_v54  ;;  %vm2498_vm6 = vmpackc.low %vm1046_vm4, %vm1046_vm4 }
  0x9b   : > { %1778 = vmatpush1.msk.msra.mxu0 %vm636_vm0, %v615_v55  ;;  %vm2687_vm11 = vmpackc.low %vm2667_vm9, %vm2667_vm9 }
  0x9c   : > { %1779 = vmatmul.mubr.msk.f32.vlgmr.msra.gmra.mrb[0].mxu0 %vm623_vm1, %v520_v56  ;;  %vm2702_vm13 = vmpackc.low %vm2676_vm10, %vm2676_vm10 }
  0x9d   : > { %711 = vmatprep.mubr.f32.mxu0 %v2282_v6 }
  0xa0   : > { %1780 = vmatmul.mubr.msk.f32.gmra.mrb[2].mxu0 %vm623_vm1, %v2445_v57 }
  0xa1   : > { %717 = vmatprep.mubr.f32.mxu0 %v2282_v6 }
  0xa4   : > { %1781 = vmatmul.mubr.msk.f32.gmra.mrb[4].mxu0 %vm623_vm1, %v2453_v58 }
  0xa5   : > { %723 = vmatprep.mubr.f32.mxu0 %v2282_v6 }
  0xa8   : > { %1782 = vmatmul.mubr.msk.f32.gmra.mrb[6].mxu0 %vm623_vm1, %v2461_v59 }
  0xa9   : > { %1849 = vmatprep.mubr.msk.f32.mxu0 %vm623_vm1, %v520_v56 }
 0x16f   : > { %v707_v63 = vpop.f32.mrb[0].mxu0 }
 0x170   : > { %v750_v0 = vmul.f32 %v733_v60, %v707_v63  ;;  %v709_v1 = vpop.f32.mrb[1].mxu0 }
 0x171   : > { %v751_v3 = vmul.f32 %v733_v60, %v709_v1 }
 0x172   : > { %v778_v4 = vadd.f32 %v761_v62, %v750_v0 }
 0x173   : > { %v779_v7 = vadd.f32 %v761_v62, %v751_v3  ;;  %v713_v8 = vpop.f32.mrb[2].mxu0 }
 0x174   : > { %v786_v9 = vmax.f32 %v778_v4, 0.0  ;;  %v752_v10 = vmul.f32 %v738_v61, %v713_v8  ;;  %v715_v11 = vpop.f32.mrb[3].mxu0 }
 0x175   : > { %v787_v13 = vmax.f32 %v779_v7, 0.0  ;;  %v753_v14 = vmul.f32 %v738_v61, %v715_v11 }
 0x176   : > { %v780_v15 = vadd.f32 %v766_v2, %v752_v10 }
 0x177   : > { %v781_v17 = vadd.f32 %v766_v2, %v753_v14  ;;  %v719_v18 = vpop.f32.mrb[4].mxu0  ;;  %v1993_v19 = vpack.i.bf16 %v787_v13, %v786_v9 }
 0x178   : > { %v788_v21 = vmax.f32 %v780_v15, 0.0  ;;  %v754_v22 = vmul.f32 %v743_v5, %v719_v18  ;;  %v721_v23 = vpop.f32.mrb[5].mxu0 }
 0x179   : > { %v789_v25 = vmax.f32 %v781_v17, 0.0  ;;  %v755_v26 = vmul.f32 %v743_v5, %v721_v23  ;;  %1994 = vrot.lane.b32.xlu0 %v1993_v19, %s2284_s17 }
 0x17a   : > { %v782_v27 = vadd.f32 %v771_v24, %v754_v22 }
 0x17b   : > { %v783_v28 = vadd.f32 %v771_v24, %v755_v26  ;;  %v725_v29 = vpop.f32.mrb[6].mxu0  ;;  %v1998_v30 = vpack.i.bf16 %v789_v25, %v788_v21  ;;  %v506_v24 = vld [vmem:[%s484_s28] sm:$0x3]  ;;  %v507_v25 = vld [vmem:[%s484_s28 + $0x2] sm:$0x3] }
 0x17c   : > { %v790_v31 = vmax.f32 %v782_v27, 0.0  ;;  %v756_v32 = vmul.f32 %v748_v16, %v725_v29  ;;  %v727_v33 = vpop.f32.mrb[7].mxu0  ;;  %v508_v26 = vld [vmem:[%s484_s28 + $0x4] sm:$0x3]  ;;  %v509_v27 = vld [vmem:[%s484_s28 + $0x6] sm:$0x3]  ;;  %v829_v29 = vcombine.low %v506_v24, %v507_v25 }
 0x17d   : > { %v791_v36 = vmax.f32 %v783_v28, 0.0  ;;  %v757_v37 = vmul.f32 %v748_v16, %v727_v33  ;;  %1999 = vrot.lane.b32.xlu1 %v1998_v30, %s2284_s17  ;;  %v830_v30 = vcombine.low %v508_v26, %v509_v27 }
 0x17e   : > { %v784_v38 = vadd.f32 %v776_v35, %v756_v32  ;;  %v837_v32 = vrot.slane %v829_v29, %v2429_v43 }
 0x17f   : > { %v785_v39 = vadd.f32 %v776_v35, %v757_v37  ;;  %v2003_v40 = vpack.i.bf16 %v791_v36, %v790_v31  ;;  %v844_v33 = vrot.slane %v830_v30, %v2429_v43  ;;  %v502_v36 = vld [vmem:[%s462_s11] sm:$0x3]  ;;  %v503_v37 = vld [vmem:[%s462_s11 + $0x2] sm:$0x3] }
 0x180   : > { %v792_v41 = vmax.f32 %v784_v38, 0.0  ;;  %v504_v38 = vld [vmem:[%s462_s11 + $0x4] sm:$0x3] }
 0x181   : > { %v793_v42 = vmax.f32 %v785_v39, 0.0  ;;  %2004 = vrot.lane.b32.xlu0 %v2003_v40, %s2284_s17  ;;  %v845_v35 = vcombine.low %v837_v32, %v844_v33  ;;  %v505_v39 = vld [vmem:[%s462_s11 + $0x6] sm:$0x3] }
 0x183   : > { %v2008_v44 = vpack.i.bf16 %v793_v42, %v792_v41  ;;  %v852_v40 = vrot.slane %v845_v35, %v2429_v43  ;;  %v798_v41 = vcombine.low %v502_v36, %v503_v37  ;;  %v799_v42 = vcombine.low %v504_v38, %v505_v39 }
 0x185   : > { %2009 = vrot.lane.b32.xlu1 %v2008_v44, %s2284_s17  ;;  %v806_v44 = vrot.slane %v798_v41, %v2429_v43 }
 0x1eb   : > { %v1995_v47 = vpop.permute.xlu0 %1994 }
 0x1ec   : > { %v1997_v49 = vunpack.i.h.bf16 %v1995_v47  ;;  %v1996_v50 = vunpack.i.l.bf16 %v1995_v47  ;;  %v813_v47 = vrot.slane %v799_v42, %v2429_v43 }
 0x1ee   : > { %v1015_v52 = vsel %vm856_vm2, %v1997_v49, 0.0  ;;  %v995_v53 = vsel %vm856_vm2, %v1996_v50, %v1997_v49  ;;  %v1011_v60 = vsel %vm856_vm2, 0.0, %v1996_v50  ;;  %v814_v49 = vcombine.high %v806_v44, %v813_v47 }
 0x1ef   : > { %v2000_v54 = vpop.permute.xlu1 %1999  ;;  %v2480_v55 = vpack.i.bf16 %v1015_v52, %v995_v53  ;;  %v525_v52 = vld [vmem:[%s2889_s8 + $0x8] sm:$0xff] }
 0x1f0   : > { %v2002_v12 = vunpack.i.h.bf16 %v2000_v54  ;;  %v2001_v56 = vunpack.i.l.bf16 %v2000_v54  ;;  %v821_v50 = vrot.slane %v814_v49, %v2429_v43  ;;  %1516 = vmatprep.mubr.f32.mxu1 %v525_v52 }
 0x1f1   : > { %2014 = vrot.lane.b32.xlu0 %v2480_v55, %s2285_s18 }
 0x1f2   : > { %v1016_v61 = vsel %vm856_vm2, %v2002_v12, 0.0  ;;  %v996_v62 = vsel %vm856_vm2, %v2001_v56, %v2002_v12  ;;  %v1012_v63 = vsel %vm856_vm2, 0.0, %v2001_v56 }
 0x1f3   : > { %v2005_v1 = vpop.permute.xlu0 %2004  ;;  %v1855_v2 = vpack.c.bf16 %v996_v62, %v995_v53  ;;  %v2496_v3 = vpack.i.bf16 %v1016_v61, %v996_v62  ;;  %v1858_v4 = vpack.c.bf16 %v1012_v63, %v1011_v60  ;;  %v2512_v13 = vpack.i.bf16 %v1012_v63, %v1011_v60  ;;  %v1442_v53 = vld [vmem:[%s2890_s9] sm:$0xff] }
 0x1f4   : > { %v2007_v7 = vunpack.i.h.bf16 %v2005_v1  ;;  %v2006_v8 = vunpack.i.l.bf16 %v2005_v1 }
 0x1f5   : > { %1857 = vmatprep.subr.msk.bf16.mxu1 %vm2492_vm5, %v1855_v2  ;;  %2019 = vrot.lane.b32.xlu0 %v2480_v55, %s2286_s19 }
 0x1f6   : > { %2069 = vrot.lane.b32.xlu1 %v2496_v3, %s2285_s18  ;;  %1860 = vmatpush1.bf16.msk.msra.mxu1 %vm2498_vm6, %v1858_v4  ;;  %v997_v14 = vsel %vm856_vm2, %v2006_v8, %v2007_v7  ;;  %v1013_v15 = vsel %vm856_vm2, 0.0, %v2006_v8  ;;  %v1017_v21 = vsel %vm856_vm2, %v2007_v7, 0.0 }
 0x1f7   : > { %v2010_v9 = vpop.permute.xlu1 %2009  ;;  %v2531_v23 = vpack.i.bf16 %v1017_v21, %v997_v14 }
 0x1f8   : > { %v2012_v10 = vunpack.i.h.bf16 %v2010_v9  ;;  %v2011_v11 = vunpack.i.l.bf16 %v2010_v9 }
 0x1f9   : > { %2024 = vrot.lane.b32.xlu0 %v2480_v55, %s2287_s20 }
 0x1fa   : > { %v998_v16 = vsel %vm856_vm2, %v2011_v11, %v2012_v10  ;;  %v1014_v17 = vsel %vm856_vm2, 0.0, %v2011_v11  ;;  %2074 = vrot.lane.b32.xlu1 %v2496_v3, %s2286_s19  ;;  %v1018_v28 = vsel %vm856_vm2, %v2012_v10, 0.0 }
 0x1fb   : > { %v1861_v18 = vpack.c.bf16 %v998_v16, %v997_v14  ;;  %v1864_v19 = vpack.c.bf16 %v1014_v17, %v1013_v15  ;;  %v2529_v22 = vpack.i.bf16 %v1014_v17, %v1013_v15  ;;  %v2148_v31 = vpack.i.bf16 %v1018_v28, %v998_v16 }
 0x1fd   : > { %2029 = vrot.lane.b32.xlu0 %v2480_v55, %s2288_s22  ;;  %1863 = vmatprep.subr.msk.bf16.mxu1 %vm2492_vm5, %v1861_v18 }
 0x1fe   : > { %2079 = vrot.lane.b32.xlu1 %v2496_v3, %s2287_s20  ;;  %1866 = vmatpush1.bf16.msk.msra.mxu1 %vm2498_vm6, %v1864_v19 }
 0x201   : > { %2034 = vrot.lane.b32.xlu0 %v2480_v55, %s2289_s23 }
 0x202   : > { %2084 = vrot.lane.b32.xlu1 %v2496_v3, %s2288_s22 }
 0x205   : > { %2039 = vrot.lane.b32.xlu0 %v2480_v55, %s2290_s25 }
 0x206   : > { %2089 = vrot.lane.b32.xlu1 %v2496_v3, %s2289_s23 }
 0x209   : > { %2044 = vrot.lane.b32.xlu0 %v2512_v13, %s2285_s18 }
 0x20a   : > { %2094 = vrot.lane.b32.xlu1 %v2496_v3, %s2290_s25 }
 0x20d   : > { %2049 = vrot.lane.b32.xlu0 %v2512_v13, %s2286_s19 }
 0x20e   : > { %2099 = vrot.lane.b32.xlu1 %v2531_v23, %s2285_s18 }
 0x211   : > { %2054 = vrot.lane.b32.xlu0 %v2512_v13, %s2287_s20 }
 0x212   : > { %2104 = vrot.lane.b32.xlu1 %v2531_v23, %s2286_s19 }
 0x215   : > { %2059 = vrot.lane.b32.xlu0 %v2512_v13, %s2288_s22 }
 0x216   : > { %2109 = vrot.lane.b32.xlu1 %v2531_v23, %s2287_s20 }
 0x219   : > { %2064 = vrot.lane.b32.xlu0 %v2512_v13, %s2289_s23 }
 0x21a   : > { %2114 = vrot.lane.b32.xlu1 %v2531_v23, %s2288_s22 }
 0x21d   : > { %2149 = vrot.lane.b32.xlu0 %v2148_v31, %s2285_s18 }
 0x21e   : > { %2119 = vrot.lane.b32.xlu1 %v2531_v23, %s2289_s23 }
 0x221   : > { %2154 = vrot.lane.b32.xlu0 %v2512_v13, %s2290_s25 }
 0x222   : > { %2124 = vrot.lane.b32.xlu1 %v2529_v22, %s2285_s18 }
 0x225   : > { %2159 = vrot.lane.b32.xlu0 %v2148_v31, %s2286_s19 }
 0x226   : > { %2129 = vrot.lane.b32.xlu1 %v2529_v22, %s2286_s19 }
 0x229   : > { %853 = vrot.lane.b32.xlu0 %v852_v40, %s2284_s17 }
 0x22a   : > { %2134 = vrot.lane.b32.xlu1 %v2529_v22, %s2287_s20 }
 0x22d   : > { %2174 = vrot.lane.b32.xlu0 %v2148_v31, %s2287_s20 }
 0x22e   : > { %2139 = vrot.lane.b32.xlu1 %v2529_v22, %s2288_s22 }
 0x231   : > { %2179 = vrot.lane.b32.xlu0 %v2480_v55, %s2291_s21 }
 0x232   : > { %2144 = vrot.lane.b32.xlu1 %v2529_v22, %s2289_s23 }
 0x235   : > { %2189 = vrot.lane.b32.xlu0 %v2148_v31, %s2288_s22 }
 0x236   : > { %822 = vrot.lane.b32.xlu1 %v821_v50, %s2284_s17 }
 0x239   : > { %2194 = vrot.lane.b32.xlu0 %v2512_v13, %s2291_s21 }
 0x23a   : > { %2164 = vrot.lane.b32.xlu1 %v2531_v23, %s2290_s25 }
 0x23d   : > { %2204 = vrot.lane.b32.xlu0 %v2148_v31, %s2289_s23 }
 0x23e   : > { %2169 = vrot.lane.b32.xlu1 %v2529_v22, %s2290_s25 }
 0x241   : > { %2209 = vrot.lane.b32.xlu0 %v2496_v3, %s2292_s12 }
 0x242   : > { %2184 = vrot.lane.b32.xlu1 %v2496_v3, %s2291_s21 }
 0x245   : > { %2219 = vrot.lane.b32.xlu0 %v2148_v31, %s2290_s25 }
 0x246   : > { %2199 = vrot.lane.b32.xlu1 %v2480_v55, %s2292_s12 }
 0x249   : > { %2224 = vrot.lane.b32.xlu0 %v2531_v23, %s2291_s21 }
 0x24a   : > { %2214 = vrot.lane.b32.xlu1 %v2512_v13, %s2292_s12 }
 0x24d   : > { %2229 = vrot.lane.b32.xlu0 %v2529_v22, %s2291_s21 }
 0x24e   : > { %2234 = vrot.lane.b32.xlu1 %v2531_v23, %s2292_s12 }
 0x251   : > { %2244 = vrot.lane.b32.xlu0 %v2148_v31, %s2292_s12 }
 0x252   : > { %2239 = vrot.lane.b32.xlu1 %v2148_v31, %s2291_s21 }
 0x255   : > { %1445 = vperm.xlu0 %1991, %v1442_v53  }
 0x256   : > { %2249 = vrot.lane.b32.xlu1 %v2529_v22, %s2292_s12 }
 0x263   : > { %v2015_v54 = vpop.permute.xlu0 %2014 }
 0x264   : > { %v2017_v55 = vunpack.i.h.bf16 %v2015_v54  ;;  %v2016_v12 = vunpack.i.l.bf16 %v2015_v54 }
 0x266   : > { %v1345_v1 = vsel %vm1343_vm7, %v2016_v12, %v2017_v55 }
 0x267   : > { %v2618_v56 = vpop.permute.xlu0 %2019 }
 0x268   : > { %v2070_v60 = vpop.permute.xlu1 %2069  ;;  %v2022_v39 = vunpack.i.h.bf16 %v2618_v56  ;;  %v2021_v40 = vunpack.i.l.bf16 %v2618_v56 }
 0x269   : > { %v2072_v61 = vunpack.i.h.bf16 %v2070_v60  ;;  %v2071_v62 = vunpack.i.l.bf16 %v2070_v60 }
 0x26a   : > { %v1100_v56 = vsel %vm1098_vm8, %v2021_v40, %v2022_v39 }
 0x26b   : > { %v2620_v63 = vpop.permute.xlu0 %2024  ;;  %v1347_v2 = vsel %vm1343_vm7, %v2071_v62, %v2072_v61 }
 0x26c   : > { %v2624_v3 = vpop.permute.xlu1 %2074  ;;  %v1867_v4 = vpack.c.bf16 %v1347_v2, %v1345_v1 }
 0x26d   : > { %v2077_v33 = vunpack.i.h.bf16 %v2624_v3  ;;  %v2076_v35 = vunpack.i.l.bf16 %v2624_v3 }
 0x26e   : > { %1868 = vmatprep.subr.bf16.mxu1 %v1867_v4 }
 0x26f   : > { %v2626_v7 = vpop.permute.xlu0 %2029  ;;  %v1102_v49 = vsel %vm1098_vm8, %v2076_v35, %v2077_v33 }
 0x270   : > { %v2628_v8 = vpop.permute.xlu1 %2079  ;;  %v1875_v46 = vpack.c.bf16 %v1102_v49, %v1100_v56 }
 0x271   : > { %v2082_v48 = vunpack.i.h.bf16 %v2628_v8  ;;  %v2081_v4 = vunpack.i.l.bf16 %v2628_v8 }
 0x273   : > { %v2630_v9 = vpop.permute.xlu0 %2034 }
 0x274   : > { %v2632_v10 = vpop.permute.xlu1 %2084 }
 0x275   : > { %v2086_v56 = vunpack.i.l.bf16 %v2632_v10 }
 0x277   : > { %v2634_v11 = vpop.permute.xlu0 %2039 }
 0x278   : > { %v2636_v13 = vpop.permute.xlu1 %2089 }
 0x27b   : > { %v2045_v14 = vpop.permute.xlu0 %2044 }
 0x27c   : > { %v2047_v15 = vunpack.i.h.bf16 %v2045_v14  ;;  %v2046_v16 = vunpack.i.l.bf16 %v2045_v14  ;;  %v2638_v17 = vpop.permute.xlu1 %2094 }
 0x27e   : > { %v1344_v18 = vsel %vm1343_vm7, %v2046_v16, %v2016_v12  ;;  %v1346_v19 = vsel %vm1343_vm7, %v2047_v15, %v2071_v62 }
 0x27f   : > { %v2050_v21 = vpop.permute.xlu0 %2049  ;;  %v1869_v22 = vpack.c.bf16 %v1346_v19, %v1344_v18 }
 0x280   : > { %v2100_v23 = vpop.permute.xlu1 %2099  ;;  %v2052_v53 = vunpack.i.h.bf16 %v2050_v21  ;;  %v2051_v54 = vunpack.i.l.bf16 %v2050_v21 }
 0x281   : > { %1870 = vmatpush1.bf16.msra.mxu1 %v1869_v22  ;;  %v2102_v30 = vunpack.i.h.bf16 %v2100_v23  ;;  %v2101_v31 = vunpack.i.l.bf16 %v2100_v23 }
 0x282   : > { %v1099_v51 = vsel %vm1098_vm8, %v2051_v54, %v2021_v40  ;;  %v1101_v19 = vsel %vm1098_vm8, %v2052_v53, %v2076_v35  ;;  %v1151_v35 = vsel %vm1147_vm12, %v2081_v4, %v2082_v48  ;;  %v2031_v48 = vunpack.i.l.bf16 %v2626_v7 }
 0x283   : > { %v2642_v24 = vpop.permute.xlu0 %2054  ;;  %v1349_v41 = vsel %vm1343_vm7, %v2101_v31, %v2102_v30  ;;  %v2026_v30 = vunpack.i.l.bf16 %v2620_v63 }
 0x284   : > { %v2644_v25 = vpop.permute.xlu1 %2104  ;;  %v2057_v39 = vunpack.i.h.bf16 %v2642_v24 }
 0x285   : > { %v2107_v60 = vunpack.i.h.bf16 %v2644_v25  ;;  %v2106_v61 = vunpack.i.l.bf16 %v2644_v25  ;;  %v2027_v25 = vunpack.i.h.bf16 %v2620_v63  ;;  %v2056_v63 = vunpack.i.l.bf16 %v2642_v24 }
 0x287   : > { %v2646_v26 = vpop.permute.xlu0 %2059  ;;  %v1104_v23 = vsel %vm1098_vm8, %v2106_v61, %v2107_v60  ;;  %v1149_v49 = vsel %vm1147_vm12, %v2026_v30, %v2027_v25  ;;  %v1150_v60 = vsel %vm1147_vm12, %v2057_v39, %v2081_v4 }
 0x288   : > { %v2648_v27 = vpop.permute.xlu1 %2109  ;;  %v1887_v52 = vpack.c.bf16 %v1151_v35, %v1149_v49 }
 0x28b   : > { %v2650_v28 = vpop.permute.xlu0 %2064 }
 0x28c   : > { %v2652_v29 = vpop.permute.xlu1 %2114 }
 0x28f   : > { %v2150_v32 = vpop.permute.xlu0 %2149 }
 0x290   : > { %v2656_v36 = vpop.permute.xlu1 %2119  ;;  %v2152_v37 = vunpack.i.h.bf16 %v2150_v32  ;;  %v2151_v38 = vunpack.i.l.bf16 %v2150_v32 }
 0x292   : > { %v1351_v42 = vsel %vm1343_vm7, %v2151_v38, %v2152_v37  ;;  %v1878_v37 = vpack.c.bf16 %v1101_v19, %v1099_v51  ;;  %v2117_v51 = vunpack.i.h.bf16 %v2652_v29  ;;  %v2116_v19 = vunpack.i.l.bf16 %v2652_v29 }
 0x293   : > { %v2662_v44 = vpop.permute.xlu0 %2154  ;;  %v1871_v47 = vpack.c.bf16 %v1351_v42, %v1349_v41  ;;  %v2112_v42 = vunpack.i.h.bf16 %v2648_v27  ;;  %v2092_v29 = vunpack.i.h.bf16 %v2636_v13 }
 0x294   : > { %v2125_v50 = vpop.permute.xlu1 %2124 }
 0x295   : > { %v2127_v55 = vunpack.i.h.bf16 %v2125_v50  ;;  %v2126_v12 = vunpack.i.l.bf16 %v2125_v50  ;;  %1872 = vmatprep.subr.bf16.mxu1 %v1871_v47  ;;  %v2111_v47 = vunpack.i.l.bf16 %v2648_v27  ;;  %v1148_v27 = vsel %vm1147_vm12, %v2056_v63, %v2026_v30 }
 0x296   : > { %v1890_v4 = vpack.c.bf16 %v1150_v60, %v1148_v27  ;;  %v2091_v63 = vunpack.i.l.bf16 %v2636_v13 }
 0x297   : > { %v2160_v1 = vpop.permute.xlu0 %2159  ;;  %v1348_v2 = vsel %vm1343_vm7, %v2126_v12, %v2101_v31  ;;  %v1350_v3 = vsel %vm1343_vm7, %v2127_v55, %v2151_v38  ;;  %v2087_v12 = vunpack.i.h.bf16 %v2632_v10  ;;  %v1153_v62 = vsel %vm1147_vm12, %v2111_v47, %v2112_v42 }
 0x298   : > { %v2130_v14 = vpop.permute.xlu1 %2129  ;;  %v2162_v15 = vunpack.i.h.bf16 %v2160_v1  ;;  %v2161_v16 = vunpack.i.l.bf16 %v2160_v1  ;;  %v1873_v18 = vpack.c.bf16 %v1350_v3, %v1348_v2 }
 0x299   : > { %v2132_v21 = vunpack.i.h.bf16 %v2130_v14  ;;  %v2131_v22 = vunpack.i.l.bf16 %v2130_v14 }
 0x29a   : > { %v1106_v8 = vsel %vm1098_vm8, %v2161_v16, %v2162_v15  ;;  %1874 = vmatpush1.bf16.msra.mxu1 %v1873_v18  ;;  %v2062_v15 = vunpack.i.h.bf16 %v2646_v26 }
 0x29b   : > { %v1881_v31 = vpack.c.bf16 %v1106_v8, %v1104_v23  ;;  %1877 = vmatprep.subr.msk.bf16.mxu1 %vm2687_vm11, %v1875_v46  ;;  %v854_v32 = vpop.permute.xlu0 %853  ;;  %v1103_v40 = vsel %vm1098_vm8, %v2131_v22, %v2106_v61  ;;  %v1105_v41 = vsel %vm1098_vm8, %v2132_v21, %v2161_v16  ;;  %v2032_v61 = vunpack.i.h.bf16 %v2626_v7 }
 0x29c   : > { %v2135_v38 = vpop.permute.xlu1 %2134  ;;  %v1884_v53 = vpack.c.bf16 %v1105_v41, %v1103_v40  ;;  %v2061_v16 = vunpack.i.l.bf16 %v2646_v26  ;;  %v1388_v7 = vsel %vm1384_vm14, %v2086_v56, %v2087_v12  ;;  %v2037_v21 = vunpack.i.h.bf16 %v2630_v9 }
 0x29d   : > { %v2137_v1 = vunpack.i.h.bf16 %v2135_v38  ;;  %v2136_v2 = vunpack.i.l.bf16 %v2135_v38  ;;  %v1386_v26 = vsel %vm1384_vm14, %v2031_v48, %v2032_v61  ;;  %v1387_v39 = vsel %vm1384_vm14, %v2062_v15, %v2086_v56 }
 0x29e   : > { %1880 = vmatpush1.bf16.msk.msra.mxu1 %vm2702_vm13, %v1878_v37  ;;  %v1899_v35 = vpack.c.bf16 %v1388_v7, %v1386_v26  ;;  %v1385_v38 = vsel %vm1384_vm14, %v2061_v16, %v2031_v48  ;;  %v1390_v41 = vsel %vm1384_vm14, %v2116_v19, %v2117_v51  ;;  %v1200_v12 = vsel %vm1196_vm15, %v2091_v63, %v2092_v29 }
 0x29f   : > { %1883 = vmatprep.subr.msk.bf16.mxu1 %vm2687_vm11, %v1881_v31  ;;  %v2175_v50 = vpop.permute.xlu0 %2174  ;;  %v1152_v22 = vsel %vm1147_vm12, %v2136_v2, %v2111_v47  ;;  %v2036_v47 = vunpack.i.l.bf16 %v2630_v9  ;;  %v2121_v56 = vunpack.i.l.bf16 %v2656_v36  ;;  %v2042_v15 = vunpack.i.h.bf16 %v2634_v11 }
 0x2a0   : > { %v2718_v24 = vpop.permute.xlu1 %2139  ;;  %v2177_v54 = vunpack.i.h.bf16 %v2175_v50  ;;  %v2176_v55 = vunpack.i.l.bf16 %v2175_v50  ;;  %v2041_v16 = vunpack.i.l.bf16 %v2634_v11 }
 0x2a1   : > { %v2142_v49 = vunpack.i.h.bf16 %v2718_v24  ;;  %v1198_v60 = vsel %vm1196_vm15, %v2036_v47, %v2037_v21 }
 0x2a2   : > { %v1155_v46 = vsel %vm1147_vm12, %v2176_v55, %v2177_v54  ;;  %1886 = vmatpush1.bf16.msk.msra.mxu1 %vm2702_vm13, %v1884_v53  ;;  %v1154_v18 = vsel %vm1147_vm12, %v2137_v1, %v2176_v55  ;;  %v1901_v53 = vpack.c.bf16 %v1387_v39, %v1385_v38  ;;  %v2067_v54 = vunpack.i.h.bf16 %v2650_v28 }
 0x2a3   : > { %v1893_v3 = vpack.c.bf16 %v1155_v46, %v1153_v62  ;;  %1889 = vmatprep.subr.msk.bf16.mxu1 %vm2492_vm5, %v1887_v52  ;;  %v2732_v10 = vpop.permute.xlu0 %2179  ;;  %v1896_v8 = vpack.c.bf16 %v1154_v18, %v1152_v22  ;;  %v2066_v55 = vunpack.i.l.bf16 %v2650_v28  ;;  %v2096_v28 = vunpack.i.l.bf16 %v2638_v17 }
 0x2a4   : > { %v2734_v14 = vpop.permute.xlu1 %2144 }
 0x2a5   : > { %v2147_v7 = vunpack.i.h.bf16 %v2734_v14  ;;  %v2146_v51 = vunpack.i.l.bf16 %v2734_v14 }
 0x2a6   : > { %1892 = vmatpush1.bf16.msk.msra.mxu1 %vm2498_vm6, %v1890_v4  ;;  %v1199_v4 = vsel %vm1196_vm15, %v2067_v54, %v2091_v63 }
 0x2a7   : > { %1895 = vmatprep.subr.msk.bf16.mxu1 %vm2492_vm5, %v1893_v3  ;;  %v2190_v23 = vpop.permute.xlu0 %2189  ;;  %v1197_v3 = vsel %vm1196_vm15, %v2066_v55, %v2036_v47 }
 0x2a8   : > { %v2192_v25 = vunpack.i.h.bf16 %v2190_v23  ;;  %v2191_v30 = vunpack.i.l.bf16 %v2190_v23  ;;  %v823_v31 = vpop.permute.xlu1 %822  ;;  %v1910_v22 = vpack.c.bf16 %v1199_v4, %v1197_v3  ;;  %v2157_v23 = vunpack.i.h.bf16 %v2662_v44 }
 0x2a9   : > { %v857_v37 = vsel %vm856_vm2, %v823_v31, %v854_v32  ;;  %v2141_v32 = vunpack.i.l.bf16 %v2718_v24  ;;  %v2122_v24 = vunpack.i.h.bf16 %v2656_v36  ;;  %v1907_v36 = vpack.c.bf16 %v1200_v12, %v1198_v60 }
 0x2aa   : > { %v859_v40 = vmul.f32 %v857_v37, %v2413_v20  ;;  %1898 = vmatpush1.bf16.msk.msra.mxu1 %vm2498_vm6, %v1896_v8  ;;  %v1392_v42 = vsel %vm1384_vm14, %v2191_v30, %v2192_v25  ;;  %v1391_v9 = vsel %vm1384_vm14, %v2142_v49, %v2191_v30  ;;  %vm1245_vm2 = vcmask 785408  }
 0x2ab   : > { %1900 = vmatprep.subr.bf16.mxu1 %v1899_v35  ;;  %v2762_v50 = vpop.permute.xlu0 %2194  ;;  %v1903_v52 = vpack.c.bf16 %v1392_v42, %v1390_v41  ;;  %v1389_v62 = vsel %vm1384_vm14, %v2141_v32, %v2116_v19  ;;  %v1247_v30 = vsel %vm1245_vm2, %v2041_v16, %v2042_v15  ;;  %v1201_v31 = vsel %vm1196_vm15, %v2146_v51, %v2121_v56 }
 0x2ac   : > { %v861_v20 = vadd.f32 %v859_v40, %v2423_v34  ;;  %v2765_v13 = vpop.permute.xlu1 %2164  ;;  %v2097_v34 = vunpack.i.h.bf16 %v2638_v17  ;;  %v1905_v2 = vpack.c.bf16 %v1391_v9, %v1389_v62  ;;  %v1202_v17 = vsel %vm1196_vm15, %v2121_v56, %v2122_v24 }
 0x2ad   : > { %v2167_v8 = vunpack.i.h.bf16 %v2765_v13  ;;  %v2166_v14 = vunpack.i.l.bf16 %v2765_v13  ;;  %v1248_v37 = vsel %vm1245_vm2, %v2157_v23, %v2096_v28  ;;  %v2182_v12 = vunpack.i.h.bf16 %v2732_v10 }
 0x2ae   : > { %v862_v27 = vmax.f32 %v861_v20, 0.0  ;;  %1902 = vmatpush1.bf16.msra.mxu1 %v1901_v53  ;;  %v1249_v11 = vsel %vm1245_vm2, %v2096_v28, %v2097_v34  ;;  %v2181_v24 = vunpack.i.l.bf16 %v2732_v10  ;;  %v2197_v62 = vunpack.i.h.bf16 %v2762_v50 }
 0x2af   : > { %1904 = vmatprep.subr.bf16.mxu1 %v1903_v52  ;;  %v2205_v61 = vpop.permute.xlu0 %2204 }
 0x2b0   : > { %v2207_v46 = vunpack.i.h.bf16 %v2205_v61  ;;  %v2206_v48 = vunpack.i.l.bf16 %v2205_v61  ;;  %1847 = vmatprep.subr.msk.mxu0 %vm636_vm0, %v862_v27  ;;  %v2778_v1 = vpop.permute.xlu1 %2169 }
 0x2b1   : > { %1848 = vmatpush3.msk.msra.mxu0 %vm636_vm0, %v862_v27  ;;  %vm1294_vm0 = vcmask 769024   ;;  %v2172_v49 = vunpack.i.h.bf16 %v2778_v1 }
 0x2b2   : > { %v1204_v18 = vsel %vm1196_vm15, %v2206_v48, %v2207_v46  ;;  %1906 = vmatpush1.bf16.msra.mxu1 %v1905_v2  ;;  %1850 = vmatmul.mubr.msk.f32.vlgmr.msra.gmra.mrb[8].mxu0 %vm623_vm1, %v2445_v57  ;;  %v2156_v57 = vunpack.i.l.bf16 %v2662_v44  ;;  %v1203_v25 = vsel %vm1196_vm15, %v2147_v7, %v2206_v48  ;;  %v2196_v46 = vunpack.i.l.bf16 %v2762_v50 }
 0x2b3   : > { %v1913_v19 = vpack.c.bf16 %v1204_v18, %v1202_v17  ;;  %1909 = vmatprep.subr.msk.bf16.mxu1 %vm2687_vm11, %v1907_v36  ;;  %v2210_v21 = vpop.permute.xlu0 %2209  ;;  %1852 = vmatprep.mubr.msk.f32.mxu0 %vm623_vm1, %v2453_v58  ;;  %v1919_v58 = vpack.c.bf16 %v1249_v11, %v1247_v30  ;;  %v1916_v38 = vpack.c.bf16 %v1203_v25, %v1201_v31 }
 0x2b4   : > { %v2185_v26 = vpop.permute.xlu1 %2184  ;;  %v2212_v35 = vunpack.i.h.bf16 %v2210_v21  ;;  %v2211_v44 = vunpack.i.l.bf16 %v2210_v21  ;;  %v1246_v41 = vsel %vm1245_vm2, %v2156_v57, %v2041_v16 }
 0x2b5   : > { %v2187_v32 = vunpack.i.h.bf16 %v2185_v26  ;;  %v2186_v52 = vunpack.i.l.bf16 %v2185_v26  ;;  %v1922_v9 = vpack.c.bf16 %v1248_v37, %v1246_v41 }
 0x2b6   : > { %1912 = vmatpush1.bf16.msk.msra.mxu1 %vm2702_vm13, %v1910_v22  ;;  %1853 = vmatmul.mubr.msk.f32.gmra.mrb[10].mxu0 %vm623_vm1, %v2461_v59  ;;  %v1251_v59 = vsel %vm1245_vm2, %v2166_v14, %v2167_v8  ;;  %v1298_v13 = vsel %vm1294_vm0, %v2211_v44, %v2212_v35  ;;  %vm1425_vm1 = vcmask 777216  }
 0x2b7   : > { %1915 = vmatprep.subr.msk.bf16.mxu1 %vm2687_vm11, %v1913_v19  ;;  %v2220_v29 = vpop.permute.xlu0 %2219  ;;  %1587 = vmatprep.mubr.f32.mxu0 %v2282_v6  ;;  %v2171_v6 = vunpack.i.l.bf16 %v2778_v1  ;;  %v1429_v28 = vsel %vm1425_vm1, %v2186_v52, %v2187_v32  ;;  %v1427_v15 = vsel %vm1425_vm1, %v2181_v24, %v2182_v12  ;;  %v1428_v17 = vsel %vm1425_vm1, %v2197_v62, %v2186_v52  ;;  %v2255_v52 = vld [vmem:[%s2411_s24 + $0x4] sm:$0x3] }
 0x2b8   : > { %v2222_v39 = vunpack.i.h.bf16 %v2220_v29  ;;  %v2221_v63 = vunpack.i.l.bf16 %v2220_v29  ;;  %v2200_v40 = vpop.permute.xlu1 %2199  ;;  %v1931_v16 = vpack.c.bf16 %v1429_v28, %v1427_v15  ;;  %v1426_v21 = vsel %vm1425_vm1, %v2196_v46, %v2181_v24 }
 0x2b9   : > { %v2202_v42 = vunpack.i.h.bf16 %v2200_v40  ;;  %v2201_v47 = vunpack.i.l.bf16 %v2200_v40  ;;  %v1250_v10 = vsel %vm1245_vm2, %v2171_v6, %v2166_v14  ;;  %v1933_v26 = vpack.c.bf16 %v1428_v17, %v1426_v21 }
 0x2ba   : > { %v1253_v20 = vsel %vm1245_vm2, %v2221_v63, %v2222_v39  ;;  %1918 = vmatpush1.bf16.msk.msra.mxu1 %vm2702_vm13, %v1916_v38  ;;  %v1252_v60 = vsel %vm1245_vm2, %v2172_v49, %v2221_v63  ;;  %v2254_v49 = vld [vmem:[%s2411_s24 + $0x2] sm:$0x3] }
 0x2bb   : > { %v1925_v53 = vpack.c.bf16 %v1253_v20, %v1251_v59  ;;  %v1296_v54 = vsel %vm1294_vm0, %v2201_v47, %v2202_v42  ;;  %1921 = vmatprep.subr.msk.bf16.mxu1 %vm2492_vm5, %v1919_v58  ;;  %v2225_v55 = vpop.permute.xlu0 %2224  ;;  %v1928_v36 = vpack.c.bf16 %v1252_v60, %v1250_v10  ;;  %v524_v59 = vld [vmem:[%s2889_s8] sm:$0xff] }
 0x2bc   : > { %v1939_v56 = vpack.c.bf16 %v1298_v13, %v1296_v54  ;;  %v2215_v27 = vpop.permute.xlu1 %2214  ;;  %v2227_v18 = vunpack.i.h.bf16 %v2225_v55  ;;  %v2226_v50 = vunpack.i.l.bf16 %v2225_v55  ;;  %v2256_v20 = vld [vmem:[%s2411_s24 + $0x6] sm:$0x3] }
 0x2bd   : > { %v2217_v34 = vunpack.i.h.bf16 %v2215_v27  ;;  %v2216_v61 = vunpack.i.l.bf16 %v2215_v27  ;;  %v1599_v6 = vcombine.low %v2255_v52, %v2256_v20 }
 0x2be   : > { %1924 = vmatpush1.bf16.msk.msra.mxu1 %vm2498_vm6, %v1922_v9  ;;  %1941 = vmatprep.subr.msk.bf16.mxu0 %vm2687_vm11, %v1939_v56  ;;  %v1431_v30 = vsel %vm1425_vm1, %v2226_v50, %v2227_v18 }
 0x2bf   : > { %v1297_v48 = vsel %vm1294_vm0, %v2217_v34, %v2211_v44  ;;  %v1295_v1 = vsel %vm1294_vm0, %v2216_v61, %v2201_v47  ;;  %1927 = vmatprep.subr.msk.bf16.mxu1 %vm2492_vm5, %v1925_v53  ;;  %v2230_v2 = vpop.permute.xlu0 %2229  ;;  %v2253_v47 = vld [vmem:[%s2411_s24] sm:$0x3]  ;;  %v1613_v53 = vrot.slane %v1599_v6, %v2429_v43 }
 0x2c0   : > { %v1942_v3 = vpack.c.bf16 %v1297_v48, %v1295_v1  ;;  %v2235_v4 = vpop.permute.xlu1 %2234  ;;  %v2231_v0 = vunpack.i.l.bf16 %v2230_v2  ;;  %v2232_v57 = vunpack.i.h.bf16 %v2230_v2  ;;  %v1598_v32 = vcombine.low %v2253_v47, %v2254_v49 }
 0x2c1   : > { %v2237_v7 = vunpack.i.h.bf16 %v2235_v4  ;;  %v2236_v51 = vunpack.i.l.bf16 %v2235_v4 }
 0x2c2   : > { %1930 = vmatpush1.bf16.msk.msra.mxu1 %vm2498_vm6, %v1928_v36  ;;  %1944 = vmatpush1.bf16.msk.msra.mxu0 %vm2702_vm13, %v1942_v3  ;;  %v1430_v35 = vsel %vm1425_vm1, %v2231_v0, %v2226_v50  ;;  %v1606_v13 = vrot.slane %v1598_v32, %v2429_v43 }
 0x2c3   : > { %1932 = vmatprep.subr.bf16.mxu1 %v1931_v16  ;;  %v2245_v19 = vpop.permute.xlu0 %2244  ;;  %v1300_v25 = vsel %vm1294_vm0, %v2236_v51, %v2237_v7 }
 0x2c4   : > { %v2247_v11 = vunpack.i.h.bf16 %v2245_v19  ;;  %v2246_v22 = vunpack.i.l.bf16 %v2245_v19  ;;  %v2240_v23 = vpop.permute.xlu1 %2239  ;;  %v1614_v54 = vcombine.low %v1606_v13, %v1613_v53  ;;  %v1615_v55 = vcombine.high %v1606_v13, %v1613_v53 }
 0x2c5   : > { %v2242_v8 = vunpack.i.h.bf16 %v2240_v23  ;;  %v2241_v14 = vunpack.i.l.bf16 %v2240_v23 }
 0x2c6   : > { %v1302_v5 = vsel %vm1294_vm0, %v2246_v22, %v2247_v11  ;;  %1934 = vmatpush1.bf16.msra.mxu1 %v1933_v26  ;;  %1837 = vst.sshfl [vmem:[%s496_s30] sm:$0x55 pattern:$0x73625140] %v1614_v54 }
 0x2c7   : > { %v1945_v58 = vpack.c.bf16 %v1302_v5, %v1300_v25  ;;  %v1433_v31 = vsel %vm1425_vm1, %v2241_v14, %v2242_v8  ;;  %v1432_v44 = vsel %vm1425_vm1, %v2232_v57, %v2241_v14  ;;  %1838 = vst.sshfl [vmem:[%s496_s30 + $0x8] sm:$0x55 pattern:$0x73625140] %v1615_v55 }
 0x2c8   : > { %v2250_v29 = vpop.permute.xlu1 %2249  ;;  %v1935_v37 = vpack.c.bf16 %v1433_v31, %v1431_v30  ;;  %v1937_v38 = vpack.c.bf16 %v1432_v44, %v1430_v35 }
 0x2c9   : > { %v2252_v39 = vunpack.i.h.bf16 %v2250_v29  ;;  %v2251_v63 = vunpack.i.l.bf16 %v2250_v29  ;;  %1947 = vmatprep.subr.msk.bf16.mxu0 %vm2687_vm11, %v1945_v58 }
 0x2ca   : > { %1936 = vmatprep.subr.bf16.mxu1 %v1935_v37 }
 0x2cb   : > { %v1301_v40 = vsel %vm1294_vm0, %v2252_v39, %v2246_v22  ;;  %v1299_v41 = vsel %vm1294_vm0, %v2251_v63, %v2236_v51  ;;  %1938 = vmatpush1.bf16.msra.mxu1 %v1937_v38 }
 0x2cc   : > { %v1948_v42 = vpack.c.bf16 %v1301_v40, %v1299_v41 }
 0x2ce   : > { %1517 = vmatmul.mubr.f32.vlgmr.msra.gmra.mrb[0].mxu1 %v524_v59  ;;  %1950 = vmatpush1.bf16.msk.msra.mxu0 %vm2702_vm13, %v1948_v42 }
 0x2d1   : > { %1836 = vmatmul.mubr.msk.f32.vlgmr.msra.gmra.mrb[12].mxu0 %vm1448_vm3, %v526_v45 }
 0x2d4   : > { %v1446_v56 = vpop.permute.xlu0 %1445 }
 0x385   : > { %v1851_v33 = vpop.f32.mrb[8].mxu0 }
 0x386   : > { %v932_v9 = vpop.f32.mrb[9].mxu0 }
 0x389   : > { %v1854_v12 = vpop.f32.mrb[10].mxu0 }
 0x38a   : > { %v942_v24 = vpop.f32.mrb[11].mxu0 }
 0x3a1   : > { %v1518_v27 = vpop.f32.mrb[0].mxu1 }
 0x3a2   : > { %v1519_v60 = vadd.f32 %v1518_v27, %v1446_v56  ;;  %v1520_v34 = vpop.f32.mrb[1].mxu1 }
 0x3a3   : > { %v1521_v61 = vadd.f32 %v1520_v34, %v1446_v56 }
 0x3a4   : > { %v1589_v62 = vpop.f32.mrb[12].mxu0 }
 0x3a5   : > { %v1590_v43 = vadd.f32 %v1589_v62, %v1519_v60  ;;  %v1591_v28 = vpop.f32.mrb[13].mxu0 }
 0x3a6   : > { %v1592_v46 = vadd.f32 %v1591_v28, %v1521_v61 }
 0x3a7   : > { %v1636_v10 = vrot.slane %v1590_v43, 4 }
 0x3a8   : > { %v1637_v48 = vrot.slane %v1592_v46, 4 }
 0x3a9   : > { %1640 = vst [vmem:[%s496_s30 + $0x10] ss:$-12 sps:$4 sm:$0xff] %v1636_v10  }
 0x3aa   : > { %1641 = vst [vmem:[%s496_s30 + $0x18] ss:$-12 sps:$4 sm:$0xff] %v1637_v48  }
 0x3ab PF: > { %s20_s15 = sadd.s32 1, %s2279_s15   ;;  %s2904_s13 = smov %s2275_s14 }
 0x3ac   : > { %p17_p5 = scmp.ge.s32.totalorder %s20_s15, 4   ;;  %s2905_s14 = smov %s2907_s16 }
 0x3ae   :  { %19 = sbr.rel (!%p17_p5) target bundleno = 2 (0x2), region = 96 }

</bundles_post_ra>
